<compile_context>
chip_gen: v7x
topology: tpu7x:2x2x1
jax: 0.10.0
libtpu: 0.0.40
codegen_flags: <defaults>
</compile_context>

<pallas_src>
import functools

import jax
import jax.numpy as jnp
from jax.experimental import pallas as pl
from jax.experimental.pallas import tpu as pltpu

IN_FEATURES = 784
OUT_FEATURES = 10
N_PAD = 128  # minimum lane-dense output width; do NOT pad K (784)


def _round_up(x, m):
    return ((x + m - 1) // m) * m


def linear_sigmoid_kernel(x_ref, w_ref, b_ref, o_ref):
    # x_ref: [TILE_B, 784] f32   w_ref: [784, 128] bf16 (VMEM-resident)
    # b_ref: [1, 128] f32        o_ref: [TILE_B, 128] bf16
    # Cast x to bf16 in-kernel (VPU, hidden under DMA) instead of a separate
    # wrapper-side XLA pad/cast pass over HBM.
    x_bf = x_ref[...].astype(jnp.bfloat16)
    z = jnp.dot(x_bf, w_ref[...], preferred_element_type=jnp.float32)
    z = z + b_ref[...]  # broadcast bias over the batch tile
    # sigmoid = 1 / (1 + exp(-z)): exp on the EUP, approx reciprocal stays off
    # the VPU divide path; both hide under the DMA pipeline.
    o_ref[...] = pl.reciprocal(1.0 + jnp.exp(-z), approx=True).astype(o_ref.dtype)


def prepare_params(w, b):
    """One-time weight prep (transpose + lane-pad + bf16 cast).

    Hoisted out of the per-forward path so the transpose/pad fusion does not
    run on every call.
    w: [10, 784] f32 (PyTorch nn.Linear weight layout), b: [10] f32.
    """
    w_t = jnp.zeros((IN_FEATURES, N_PAD), jnp.bfloat16).at[:, :OUT_FEATURES].set(
        w.T.astype(jnp.bfloat16))
    b_p = jnp.zeros((1, N_PAD), jnp.float32).at[:, :OUT_FEATURES].set(
        b.astype(jnp.float32).reshape(1, -1))
    return w_t, b_p


@functools.partial(jax.jit, static_argnames=("tile_b", "keep_padded"))
def net_forward(x, w_t, b_p, *, tile_b=2048, keep_padded=False):
    """Forward pass of Net: sigmoid(x @ W.T + b).

    x:   [B, 784] float32
    w_t: [784, 128] bfloat16 (from prepare_params)
    b_p: [1, 128]  float32   (from prepare_params)
    Returns [B, 10] bf16 (or the lane-padded [B, 128] if keep_padded=True,
    which avoids the extra lane-slice HBM pass for consumers that can take it).
    """
    B = x.shape[0]
    # Keep the batch tile a multiple of 8 (f32 sublane) and no larger than the
    # (rounded-up) batch; ragged last tile handled by pl.cdiv grid.
    tile_b = min(tile_b, _round_up(B, 8))
    grid = (pl.cdiv(B, tile_b),)

    # VMEM @ tile_b=2048: x tile 6.3 MiB + out tile 0.5 MiB, double-buffered,
    # plus ~0.2 MiB resident weights -> ~14 MiB.  Bump the scoped limit so the
    # 16 MiB v5e default is never the constraint.
    out = pl.pallas_call(
        linear_sigmoid_kernel,
        out_shape=jax.ShapeDtypeStruct((B, N_PAD), jnp.bfloat16),
        grid=grid,
        in_specs=[
            pl.BlockSpec((tile_b, IN_FEATURES), lambda i: (i, 0)),  # batch-tiled x
            pl.BlockSpec((IN_FEATURES, N_PAD), lambda i: (0, 0)),   # resident W
            pl.BlockSpec((1, N_PAD), lambda i: (0, 0)),             # resident bias
        ],
        out_specs=pl.BlockSpec((tile_b, N_PAD), lambda i: (i, 0)),
        compiler_params=pltpu.CompilerParams(
            # Batch axis is embarrassingly parallel: lets Mosaic shard grid
            # steps across both TensorCores on v7x; no-op on v5e/v6e.
            dimension_semantics=("parallel",),
            vmem_limit_bytes=32 * 1024 * 1024,
        ),
        cost_estimate=pl.CostEstimate(
            flops=2 * B * IN_FEATURES * N_PAD,
            bytes_accessed=(B * IN_FEATURES * 4        # x f32 read
                            + IN_FEATURES * N_PAD * 2  # weights bf16
                            + N_PAD * 4                # bias f32
                            + B * N_PAD * 2),          # out bf16 write
            transcendentals=B * N_PAD,
        ),
    )(x, w_t, b_p)

    if keep_padded:
        return out  # [B, 128] bf16, lane-dense; caller slices/fuses as needed
    # Lane slice to match the PyTorch forward's [B, 10] output.
    return out[:, :OUT_FEATURES]


if __name__ == "__main__":
    key = jax.random.PRNGKey(0)
    kx, kw, kb = jax.random.split(key, 3)

    B = 8
    in_features, out_features = IN_FEATURES, OUT_FEATURES

    # Deterministic PyTorch-style init: uniform(-1/sqrt(fan_in), 1/sqrt(fan_in))
    bound = 1.0 / jnp.sqrt(jnp.float32(in_features))
    w = jax.random.uniform(kw, (out_features, in_features), jnp.float32, -bound, bound)
    b = jax.random.uniform(kb, (out_features,), jnp.float32, -bound, bound)

    x = jax.random.normal(kx, (B, in_features), jnp.float32)

    # Weight prep happens once, outside the per-forward path.
    w_t, b_p = prepare_params(w, b)
    w_t, b_p = jax.block_until_ready((w_t, b_p))

    out = net_forward(x, w_t, b_p)
    out = jax.block_until_ready(out)

    # Reference check in plain JAX (f32); bf16 matmul inputs + bf16 output +
    # approx reciprocal give ~1e-3 error on the bounded sigmoid output, so
    # 2e-2 is comfortable.
    ref = jax.nn.sigmoid(x @ w.T + b)
    assert out.shape == (B, out_features)
    assert jnp.allclose(out.astype(jnp.float32), ref, atol=2e-2, rtol=2e-2), (
        float(jnp.max(jnp.abs(out.astype(jnp.float32) - ref))))

    print("KERNEL_OK")
</pallas_src>

<mosaic_0001>
module attributes {stable_mosaic.version = 11 : i64} {
  func.func @linear_sigmoid_kernel(%arg0: i32, %arg1: memref<8x784xf32, #tpu.memory_space<vmem>>, %arg2: memref<784x128xbf16, #tpu.memory_space<vmem>>, %arg3: memref<1x128xf32, #tpu.memory_space<vmem>>, %arg4: memref<8x128xbf16, #tpu.memory_space<vmem>>) attributes {dimension_semantics = [#tpu.dimension_semantics<parallel>], iteration_bounds = array<i64: 1>, scalar_prefetch = 0 : i64, scratch_operands = 0 : i64, tpu.core_type = #tpu.core_type<tc>, window_params = [{transform_indices = @transform_0, window_bounds = array<i64: 8, 784>}, {pipeline_mode = #tpu.pipeline_mode<synchronous>, transform_indices = @transform_1, window_bounds = array<i64: 784, 128>}, {pipeline_mode = #tpu.pipeline_mode<synchronous>, transform_indices = @transform_2, window_bounds = array<i64: 1, 128>}, {transform_indices = @transform_3, window_bounds = array<i64: 8, 128>}]} {
    %c0 = arith.constant 0 : index
    %c0_0 = arith.constant 0 : index
    %0 = vector.load %arg1[%c0, %c0_0] : memref<8x784xf32, #tpu.memory_space<vmem>>, vector<8x784xf32>
    %1 = arith.truncf %0 : vector<8x784xf32> to vector<8x784xbf16>
    %c0_1 = arith.constant 0 : index
    %c0_2 = arith.constant 0 : index
    %2 = vector.load %arg2[%c0_1, %c0_2] : memref<784x128xbf16, #tpu.memory_space<vmem>>, vector<784x128xbf16>
    %cst = arith.constant dense<0.000000e+00> : vector<8x128xf32>
    %3 = tpu.matmul %1, %2, %cst {dimension_numbers = #tpu.dot_dimension_numbers<[1], [0], [0], [1], [0, 0, 1, 1], [], []>} : vector<8x784xbf16>, vector<784x128xbf16>, vector<8x128xf32> -> vector<8x128xf32>
    %c0_3 = arith.constant 0 : index
    %c0_4 = arith.constant 0 : index
    %4 = vector.load %arg3[%c0_3, %c0_4] : memref<1x128xf32, #tpu.memory_space<vmem>>, vector<1x128xf32>
    %5 = vector.broadcast %4 : vector<1x128xf32> to vector<8x128xf32>
    %6 = arith.addf %3, %5 : vector<8x128xf32>
    %cst_5 = arith.constant 0.000000e+00 : f32
    %7 = vector.broadcast %cst_5 : f32 to vector<8x128xf32>
    %8 = arith.subf %7, %6 : vector<8x128xf32>
    %9 = math.exp %8 : vector<8x128xf32>
    %cst_6 = arith.constant 1.000000e+00 : f32
    %10 = vector.broadcast %cst_6 : f32 to vector<8x128xf32>
    %11 = arith.addf %10, %9 : vector<8x128xf32>
    %12 = tpu.reciprocal %11 {approx = true} : vector<8x128xf32> -> vector<8x128xf32>
    %13 = arith.truncf %12 : vector<8x128xf32> to vector<8x128xbf16>
    %c0_7 = arith.constant 0 : index
    %c0_8 = arith.constant 0 : index
    %14 = vector.load %arg4[%c0_7, %c0_8] : memref<8x128xbf16, #tpu.memory_space<vmem>>, vector<8x128xbf16>
    tpu.vector_store %arg4[%c0_7, %c0_8], %13 {strides = array<i32>} : memref<8x128xbf16, #tpu.memory_space<vmem>>, vector<8x128xbf16>,
    return
  }
  func.func @transform_0(%arg0: i32) -> (i32, i32) {
    %c0_i32 = arith.constant 0 : i32
    %c0_i32_0 = arith.constant 0 : i32
    return %arg0, %c0_i32 : i32, i32
  }
  func.func @transform_1(%arg0: i32) -> (i32, i32) {
    %c0_i32 = arith.constant 0 : i32
    %c0_i32_0 = arith.constant 0 : i32
    %c0_i32_1 = arith.constant 0 : i32
    return %c0_i32, %c0_i32_0 : i32, i32
  }
  func.func @transform_2(%arg0: i32) -> (i32, i32) {
    %c0_i32 = arith.constant 0 : i32
    %c0_i32_0 = arith.constant 0 : i32
    %c0_i32_1 = arith.constant 0 : i32
    return %c0_i32, %c0_i32_0 : i32, i32
  }
  func.func @transform_3(%arg0: i32) -> (i32, i32) {
    %c0_i32 = arith.constant 0 : i32
    %c0_i32_0 = arith.constant 0 : i32
    return %arg0, %c0_i32 : i32, i32
  }
}

</mosaic_0001>

<bundles_post_ra>
// kernel: net_forward.1
= control target key start
LH: loop header
LB: loop body
LE: loop exit
PB: predicated region body
PF: predicated region fallthrough
CT: control target
= control target key end

     0   :  { %8 = vsyncpa [#allocation3], 0  ;;  %s972_s0 = inlined_call_operand.hbm [shape: f32[8,784], index: 0, kind: input, shape index: {}]   ;;  %s973_s1 = inlined_call_operand.hbm [shape: bf16[784,128], index: 1, kind: input, shape index: {}]   ;;  %s974_s2 = inlined_call_operand.vmem [shape: f32[1,128], index: 2, kind: input, shape index: {}]   ;;  %s975_s3 = inlined_call_operand.hbm [shape: bf16[8,128], index: 3, kind: output, shape index: {}]  }
   0x1   :  { %9 = vsyncpa [#allocation6], 0 }
   0x2   :  { %10 = vsyncpa [#allocation4], 0  ;;  %s899_s12 = smov [#allocation2]   ;;  %s900_s14 = smov [#allocation5]  }
   0x3   :  { %s17_s13 = sshll.u32 %s899_s12, 4  ;;  %s26_s15 = sshll.u32 %s900_s14, 4  ;;  %s18_s13 = int_to_ptr.vmem [resolvable:$true] %s17_s13  ;;  %s926_s15 = int_to_ptr.vmem [resolvable:$true] %s26_s15 }
   0x4   :  { %s827_s18 = scalar_lea.hbm %s972_s0, 896 }
   0x5   :  { %p828_p0 = scmp.ne.s32.totalorder %s972_s0, %s827_s18  ;;  %p831_p1 = scmp.lt.u32.totalorder %s827_s18, %s972_s0 }
   0x7   :  { %p833_p2 = pnand %p831_p1, %p828_p0 }
   0x9   :  { %836 = shalt.err (!%p833_p2)
}
   0xa   :  { %s837_s23 = scalar_lea.vmem %s18_s13, 896  ;;  %p842_p4 = scmp.lt.s32.totalorder %s18_s13, %s18_s13 }
   0xb   :  { %p838_p3 = scmp.ne.s32.totalorder %s18_s13, %s837_s23  ;;  %p843_p5 = scmp.lt.s32.totalorder %s837_s23, %s837_s23 }
   0xd   :  { %p844_p6 = por %p843_p5, %p842_p4 }
   0xf   :  { %p845_p7 = pnand %p844_p6, %p838_p3 }
  0x11   :  { %848 = shalt.err (!%p845_p7)
}
  0x12   :  { %20 = dma.hbm_to_vmem [thread:$0]  %s972_s0, 896, %s18_s13, [#allocation3]  }
  0x13   :  { %s849_s28 = scalar_lea.hbm %s973_s1, 6272 }
  0x14   :  { %p850_p8 = scmp.ne.s32.totalorder %s973_s1, %s849_s28  ;;  %p853_p9 = scmp.lt.u32.totalorder %s849_s28, %s973_s1 }
  0x16   :  { %p855_p10 = pnand %p853_p9, %p850_p8 }
  0x18   :  { %858 = shalt.err (!%p855_p10)
}
  0x19   :  { %s859_s6 = scalar_lea.vmem %s926_s15, 6272  ;;  %p864_p12 = scmp.lt.s32.totalorder %s926_s15, %s926_s15 }
  0x1a   :  { %p860_p11 = scmp.ne.s32.totalorder %s926_s15, %s859_s6  ;;  %p865_p13 = scmp.lt.s32.totalorder %s859_s6, %s859_s6 }
  0x1c   :  { %p866_p0 = por %p865_p13, %p864_p12 }
  0x1e   :  { %p867_p1 = pnand %p866_p0, %p860_p11 }
  0x20   :  { %870 = shalt.err (!%p867_p1)
}
  0x21   :  { %s901_s0 = smov 64   ;;  %s902_s7 = smov 4  }
  0x22   :  { %32 = dma.hbm_to_vmem [thread:$0]  %s973_s1, 6272, %s926_s15, [#allocation6], %s901_s0, %s901_s0, %s902_s7  }
  0x23   :  { %893 = dma.done.wait [#allocation3], 896  }
  0x24   :  { %894 = vsyncadd [#allocation3], 4294966400 }
  0x25   :  { %895 = dma.done.wait [#allocation6], 6272  }
  0x26   :  { %896 = vsyncadd [#allocation6], 4294961024  ;;  %v774_v0 = vld [vmem:[#allocation5 + $0x40] sm:$0xff]   ;;  %v778_v4 = vld [vmem:[#allocation5 + $0x48] sm:$0xff]   ;;  %v903_v44 = vmov 0.0   ;;  %vm904_vm0 = vmmov 0  }
  0x27   :  { %v775_v1 = vld [vmem:[#allocation5] sm:$0xff]   ;;  %693 = vmatprep.subr.bf16.mxu0 %v774_v0  ;;  %v779_v5 = vld [vmem:[#allocation5 + $0x8] sm:$0xff]   ;;  %v782_v8 = vld [vmem:[#allocation5 + $0x50] sm:$0xff]   ;;  %vm455_vm1 = vcmask 130048  }
  0x28   :  { %v776_v2 = vld [vmem:[#allocation5 + $0xc0] sm:$0xff]   ;;  %694 = vmatpush3.bf16.msra.mxu0 %v775_v1  ;;  %v780_v6 = vld [vmem:[#allocation5 + $0xc8] sm:$0xff]   ;;  %v783_v9 = vld [vmem:[#allocation5 + $0x10] sm:$0xff]  }
  0x29   :  { %v777_v3 = vld [vmem:[#allocation5 + $0x80] sm:$0xff]   ;;  %715 = vmatprep.subr.bf16.mxu1 %v776_v2  ;;  %695 = vmatprep.subr.bf16.mxu0 %v778_v4  ;;  %v781_v7 = vld [vmem:[#allocation5 + $0x88] sm:$0xff]   ;;  %v784_v10 = vld [vmem:[#allocation5 + $0xd0] sm:$0xff]  }
  0x2a   :  { %716 = vmatpush3.bf16.msra.mxu1 %v777_v3  ;;  %v785_v11 = vld [vmem:[#allocation5 + $0x90] sm:$0xff]   ;;  %v786_v12 = vld [vmem:[#allocation5 + $0x58] sm:$0xff]   ;;  %v790_v16 = vld [vmem:[#allocation5 + $0x60] sm:$0xff]  }
  0x2b   :  { %717 = vmatprep.subr.bf16.mxu1 %v780_v6  ;;  %v787_v13 = vld [vmem:[#allocation5 + $0x18] sm:$0xff]   ;;  %v791_v17 = vld [vmem:[#allocation5 + $0x20] sm:$0xff]   ;;  %v794_v20 = vld [vmem:[#allocation5 + $0x68] sm:$0xff]  }
  0x2c   :  { %696 = vmatpush3.bf16.msra.mxu0 %v779_v5  ;;  %v788_v14 = vld [vmem:[#allocation5 + $0xd8] sm:$0xff]   ;;  %v792_v18 = vld [vmem:[#allocation5 + $0xe0] sm:$0xff]   ;;  %v795_v21 = vld [vmem:[#allocation5 + $0x28] sm:$0xff]  }
  0x2d   :  { %697 = vmatprep.subr.bf16.mxu0 %v782_v8  ;;  %v789_v15 = vld [vmem:[#allocation5 + $0x98] sm:$0xff]   ;;  %v793_v19 = vld [vmem:[#allocation5 + $0xa0] sm:$0xff]   ;;  %v796_v22 = vld [vmem:[#allocation5 + $0xe8] sm:$0xff]  }
  0x2e   :  { %718 = vmatpush3.bf16.msra.mxu1 %v781_v7  ;;  %v797_v23 = vld [vmem:[#allocation5 + $0xa8] sm:$0xff]   ;;  %v798_v24 = vld [vmem:[#allocation5 + $0x70] sm:$0xff]   ;;  %v802_v28 = vld [vmem:[#allocation5 + $0x78] sm:$0xff]  }
  0x2f   :  { %719 = vmatprep.subr.bf16.mxu1 %v784_v10  ;;  %v799_v25 = vld [vmem:[#allocation5 + $0x30] sm:$0xff]   ;;  %v803_v29 = vld [vmem:[#allocation5 + $0x38] sm:$0xff]   ;;  %v42_v34 = vld [vmem:[#allocation2] sm:$0xff] }
  0x30   :  { %698 = vmatpush3.bf16.msra.mxu0 %v783_v9  ;;  %v800_v26 = vld [vmem:[#allocation5 + $0xf0] sm:$0xff]   ;;  %v804_v30 = vld [vmem:[#allocation5 + $0xf8] sm:$0xff]   ;;  %v49_v35 = vpack.c.bf16 %v42_v34, %v42_v34  ;;  %v806_v36 = vld [vmem:[#allocation5 + $0x140] sm:$0xff]  }
  0x31   :  { %699 = vmatprep.subr.bf16.mxu0 %v786_v12  ;;  %v801_v27 = vld [vmem:[#allocation5 + $0xb0] sm:$0xff]   ;;  %v805_v33 = vld [vmem:[#allocation5 + $0xb8] sm:$0xff]   ;;  %v45_v37 = vld [vmem:[#allocation2 + $0x18] sm:$0xff] }
  0x32   :  { %720 = vmatpush3.bf16.msra.mxu1 %v785_v11  ;;  %v43_v31 = vld [vmem:[#allocation2 + $0x8] sm:$0xff]  ;;  %v52_v38 = vpack.c.bf16 %v45_v37, %v45_v37  ;;  %v807_v39 = vld [vmem:[#allocation5 + $0x100] sm:$0xff]   ;;  %v44_v40 = vld [vmem:[#allocation2 + $0x10] sm:$0xff] }
  0x33   :  { %721 = vmatprep.subr.bf16.mxu1 %v788_v14  ;;  %v50_v32 = vpack.c.bf16 %v43_v31, %v43_v31  ;;  %v51_v41 = vpack.c.bf16 %v44_v40, %v44_v40  ;;  %v808_v42 = vld [vmem:[#allocation5 + $0x148] sm:$0xff]   ;;  %v810_v45 = vld [vmem:[#allocation5 + $0x150] sm:$0xff]   ;;  %v812_v47 = vld [vmem:[#allocation5 + $0x158] sm:$0xff]  }
  0x34   :  { %700 = vmatpush3.bf16.msra.mxu0 %v787_v13  ;;  %531 = vmatprep.mubr.bf16.mxu1 %v52_v38  ;;  %v809_v43 = vld [vmem:[#allocation5 + $0x108] sm:$0xff]   ;;  %v811_v46 = vld [vmem:[#allocation5 + $0x110] sm:$0xff]   ;;  %v813_v48 = vld [vmem:[#allocation5 + $0x118] sm:$0xff]  }
  0x35   :  { %701 = vmatprep.subr.bf16.mxu0 %v790_v16  ;;  %491 = vmatprep.mubr.bf16.mxu0 %v50_v32  ;;  %v814_v49 = vld [vmem:[#allocation5 + $0x160] sm:$0xff]   ;;  %v816_v51 = vld [vmem:[#allocation5 + $0x168] sm:$0xff]   ;;  %v47_v53 = vld [vmem:[#allocation2 + $0x28] sm:$0xff] }
  0x36   :  { %722 = vmatpush3.bf16.msra.mxu1 %v789_v15  ;;  %v815_v50 = vld [vmem:[#allocation5 + $0x120] sm:$0xff]   ;;  %v54_v54 = vpack.c.bf16 %v47_v53, %v47_v53  ;;  %v48_v55 = vld [vmem:[#allocation2 + $0x30] sm:$0xff]  ;;  %v817_v56 = vld [vmem:[#allocation5 + $0x128] sm:$0xff]  }
  0x37   :  { %723 = vmatprep.subr.bf16.mxu1 %v792_v18  ;;  %v822_v52 = vld [vmem:[#allocation5 + $0x180] sm:$0xff]   ;;  %v55_v57 = vpack.c.bf16 %v48_v55, %v48_v55  ;;  %v818_v58 = vld [vmem:[#allocation5 + $0x170] sm:$0xff]   ;;  %v820_v60 = vld [vmem:[#allocation5 + $0x178] sm:$0xff]  }
  0x38   :  { %702 = vmatpush3.bf16.msra.mxu0 %v791_v17  ;;  %v819_v59 = vld [vmem:[#allocation5 + $0x130] sm:$0xff]   ;;  %v821_v61 = vld [vmem:[#allocation5 + $0x138] sm:$0xff]   ;;  %v46_v62 = vld [vmem:[#allocation2 + $0x20] sm:$0xff] }
  0x39   :  { %703 = vmatprep.subr.bf16.mxu0 %v794_v20  ;;  %v53_v63 = vpack.c.bf16 %v46_v62, %v46_v62  ;;  %v642_v1 = vld [vmem:[%s974_s2] ss:$0 sm:$0xff]  ;;  %s905_s2 = smov [#allocation7]  }
  0x3a   :  { %724 = vmatpush3.bf16.msra.mxu1 %v793_v19  ;;  %s632_s11 = sshll.u32 %s905_s2, 4  ;;  %s633_s11 = int_to_ptr.vmem [resolvable:$true] %s632_s11 }
  0x3b   :  { %725 = vmatprep.subr.bf16.mxu1 %v796_v22  ;;  %s871_s12 = scalar_lea.vmem %s633_s11, 64  ;;  %p876_p3 = scmp.lt.s32.totalorder %s633_s11, %s633_s11 }
  0x3c   :  { %704 = vmatpush3.bf16.msra.mxu0 %v795_v21  ;;  %p872_p2 = scmp.ne.s32.totalorder %s633_s11, %s871_s12  ;;  %p877_p4 = scmp.lt.s32.totalorder %s871_s12, %s871_s12 }
  0x3d   :  { %705 = vmatprep.subr.bf16.mxu0 %v798_v24 }
  0x3e   :  { %726 = vmatpush3.bf16.msra.mxu1 %v797_v23  ;;  %p878_p5 = por %p877_p4, %p876_p3 }
  0x3f   :  { %727 = vmatprep.subr.bf16.mxu1 %v800_v26 }
  0x40   :  { %706 = vmatpush3.bf16.msra.mxu0 %v799_v25  ;;  %p879_p6 = pnand %p878_p5, %p872_p2 }
  0x41   :  { %707 = vmatprep.subr.bf16.mxu0 %v802_v28 }
  0x42   :  { %728 = vmatpush3.bf16.msra.mxu1 %v801_v27 }
  0x43   :  { %729 = vmatprep.subr.bf16.mxu1 %v804_v30 }
  0x44   :  { %708 = vmatpush3.bf16.msra.mxu0 %v803_v29 }
  0x45   :  { %737 = vmatprep.subr.bf16.mxu0 %v806_v36 }
  0x46   :  { %730 = vmatpush3.bf16.msra.mxu1 %v805_v33 }
  0x47   :  { %492 = vmatmul.mubr.bf16.vlgmr.msra.gmra.mrb[0].mxu0 %v49_v35  ;;  %761 = vmatprep.subr.bf16.mxu1 %v903_v44 }
  0x48   :  { %738 = vmatpush3.bf16.msra.mxu0 %v807_v39  ;;  %571 = vmatprep.mubr.bf16.mxu0 %v54_v54 }
  0x49   :  { %532 = vmatmul.mubr.bf16.vlgmr.msra.gmra.mrb[0].mxu1 %v51_v41  ;;  %739 = vmatprep.subr.bf16.mxu0 %v808_v42 }
  0x4a   :  { %763 = vmatprep.mubr.msk.bf16.mxu1 %vm904_vm0, %v903_v44  ;;  %762 = vmatpush3.bf16.msra.mxu1 %v822_v52 }
  0x4c   :  { %740 = vmatpush3.bf16.msra.mxu0 %v809_v43 }
  0x4d   :  { %741 = vmatprep.subr.bf16.mxu0 %v810_v45 }
  0x50   :  { %742 = vmatpush3.bf16.msra.mxu0 %v811_v46 }
  0x51   :  { %743 = vmatprep.subr.bf16.mxu0 %v812_v47  ;;  %764 = vmatmul.mubr.msk.bf16.vlgmr.msra.gmra.mrb[4].mxu1 %vm455_vm1, %v55_v57 }
  0x54   :  { %744 = vmatpush3.bf16.msra.mxu0 %v813_v48 }
  0x55   :  { %745 = vmatprep.subr.bf16.mxu0 %v814_v49 }
  0x58   :  { %746 = vmatpush3.bf16.msra.mxu0 %v815_v50 }
  0x59   :  { %747 = vmatprep.subr.bf16.mxu0 %v816_v51 }
  0x5c   :  { %748 = vmatpush3.bf16.msra.mxu0 %v817_v56 }
  0x5d   :  { %749 = vmatprep.subr.bf16.mxu0 %v818_v58 }
  0x60   :  { %750 = vmatpush3.bf16.msra.mxu0 %v819_v59 }
  0x61   :  { %751 = vmatprep.subr.bf16.mxu0 %v820_v60 }
  0x64   :  { %752 = vmatpush3.bf16.msra.mxu0 %v821_v61 }
  0x67   :  { %572 = vmatmul.mubr.bf16.vlgmr.msra.gmra.mrb[4].mxu0 %v53_v63 }
 0x11a   :  { %v709_v0 = vpop.f32.mrb[0].mxu0 }
 0x11b   :  { %v710_v2 = vpop.f32.mrb[1].mxu0 }
 0x11c   :  { %v711_v3 = vadd.f32 %v710_v2, %v709_v0  ;;  %v712_v4 = vpop.f32.mrb[2].mxu0  ;;  %v731_v5 = vpop.f32.mrb[0].mxu1 }
 0x11d   :  { %v713_v6 = vpop.f32.mrb[3].mxu0  ;;  %v732_v8 = vpop.f32.mrb[1].mxu1 }
 0x11e   :  { %v494_v7 = vadd.f32 %v711_v3, %v642_v1  ;;  %v733_v9 = vadd.f32 %v732_v8, %v731_v5  ;;  %v734_v10 = vpop.f32.mrb[2].mxu1 }
 0x11f   :  { %v735_v11 = vpop.f32.mrb[3].mxu1 }
 0x120   :  { %v534_v12 = vadd.f32 %v733_v9, %v494_v7 }
 0x124   :  { %v613_v13 = vpop.f32.mrb[4].mxu1 }
 0x125   :  { %v765_v14 = vpop.f32.mrb[5].mxu1 }
 0x126   :  { %v616_v15 = vpop.f32.mrb[6].mxu1 }
 0x127   :  { %v766_v16 = vpop.f32.mrb[7].mxu1 }
 0x13a   :  { %v753_v17 = vpop.f32.mrb[4].mxu0 }
 0x13b   :  { %v754_v18 = vpop.f32.mrb[5].mxu0 }
 0x13c   :  { %v755_v19 = vadd.f32 %v754_v18, %v753_v17  ;;  %v756_v20 = vpop.f32.mrb[6].mxu0 }
 0x13d   :  { %v757_v21 = vpop.f32.mrb[7].mxu0 }
 0x13e   :  { %v574_v22 = vadd.f32 %v755_v19, %v534_v12 }
 0x140   :  { %v614_v23 = vadd.f32 %v613_v13, %v574_v22 }
 0x142   :  { %v619_v24 = vsub.f32 0.0, %v614_v23 }
 0x144   :  { %v620_v25 = vmul.f32 1.442695, %v619_v24 }
 0x146   :  { %823 = vpow2.f32 %v620_v25 }
 0x150   :  { %v824_v26 = vpop.eup %823 }
 0x151   :  { %v622_v27 = vadd.f32 1.0, %v824_v26 }
 0x153   :  { %825 = vrcp.f32 %v622_v27 }
 0x15d   :  { %v826_v28 = vpop.eup %825 }
 0x15e   :  { %v624_v29 = vpack.c.bf16 %v826_v28, %v826_v28 }
 0x160   :  { %625 = vst [vmem:[#allocation7] sm:$0xf] %v624_v29 }
 0x161   :  { %882 = shalt.err (!%p879_p6)
}
 0x162   :  { %s883_s15 = scalar_lea.hbm %s975_s3, 64 }
 0x163   :  { %p884_p7 = scmp.ne.s32.totalorder %s975_s3, %s883_s15  ;;  %p887_p8 = scmp.lt.u32.totalorder %s883_s15, %s975_s3 }
 0x165   :  { %p889_p9 = pnand %p887_p8, %p884_p7 }
 0x167   :  { %892 = shalt.err (!%p889_p9)
}
 0x168   :  { %635 = dma.vmem_to_hbm [thread:$0]  %s633_s11, 64, %s975_s3, [#allocation4]  }
 0x169   :  { %897 = dma.done.wait [#allocation4], 64  }
 0x16a   :  { %898 = vsyncadd [#allocation4], 4294967232 }
 0x16b   :  { %639 = vsyncpa [#allocation3], 1 }
 0x16c   :  { %640 = vsyncpa [#allocation6], 1 }
 0x16d   :  { %641 = vsyncpa [#allocation4], 1 }

</bundles_post_ra>
